<compile_context>
chip_gen: v7x
topology: tpu7x:2x2x1
jax: 0.10.0
libtpu: 0.0.40
codegen_flags: <defaults>
</compile_context>

<pallas_src>
import jax
import jax.numpy as jnp
from jax.experimental import pallas as pl
from jax.experimental.pallas import tpu as pltpu

_LANES = 128                            # vreg lane width
_MAX_TILE_ROWS = 2048                   # bounded so v7x (64 MiB VMEM) stays safe
_TILE_BUDGET_BYTES = 8 * 1024 * 1024    # target bytes for ONE input row-tile


# ----------------------------- kernel bodies ------------------------------ #

def _row_dot_f32(x_ref, w_ref):
    """Per-row dot product sum_f x[r, f] * w[0, f] with f32 accumulation.

    Accumulates 128-lane chunk products into a (rows, 128) f32 accumulator and
    performs a single lane (XLU) reduce at the end, so no (rows, F) f32
    intermediate is materialized (VMEM scratch ~rows*512 B instead of
    rows*F*4 B).  VPU multiply + XLU reduce; no MXU involvement.
    """
    rows, f = x_ref.shape
    n_full = f // _LANES
    acc = None
    for c in range(n_full):                      # static trip count -> static slices
        lo = c * _LANES
        xc = x_ref[:, lo:lo + _LANES].astype(jnp.float32)
        wc = w_ref[:, lo:lo + _LANES].astype(jnp.float32)
        prod = xc * wc
        acc = prod if acc is None else acc + prod
    y = (jnp.sum(acc, axis=-1, keepdims=True) if acc is not None
         else jnp.zeros((rows, 1), jnp.float32))
    rem = f - n_full * _LANES                    # F is a multiple of 128 for all
    if rem:                                      # supported encoders; keep a fallback
        xc = x_ref[:, n_full * _LANES:].astype(jnp.float32)
        wc = w_ref[:, n_full * _LANES:].astype(jnp.float32)
        y = y + jnp.sum(xc * wc, axis=-1, keepdims=True)
    return y


def _affinity_mlp_kernel(x_ref, w_ref, b_ref, o_ref):
    # x_ref: (T, F) VMEM   w_ref: (1, F) VMEM   b_ref: (1, 1) SMEM   o_ref: (T, 1)
    y = _row_dot_f32(x_ref, w_ref) + b_ref[0, 0]
    o_ref[...] = jnp.maximum(y, 0.0).astype(o_ref.dtype)          # ReLU


def _affinity_mlp_pair_kernel(xa_ref, xb_ref, wa_ref, wb_ref, b_ref, o_ref):
    # Fused concat: relu([xa, xb] @ [wa, wb].T + b) without the (N, 2C) copy.
    y = _row_dot_f32(xa_ref, wa_ref) + _row_dot_f32(xb_ref, wb_ref) + b_ref[0, 0]
    o_ref[...] = jnp.maximum(y, 0.0).astype(o_ref.dtype)


# ------------------------------- wrappers --------------------------------- #

def _resolve_tile_rows(n, tile_n, f_total, x_itemsize):
    if tile_n is None:
        tile_n = _TILE_BUDGET_BYTES // max(1, f_total * x_itemsize)
        tile_n = min(_MAX_TILE_ROWS, tile_n)
    tile_n = max(32, (int(tile_n) // 32) * 32)   # sublane-safe for f32/bf16/int8
    if n <= tile_n:
        return n      # single block; block dim == full array dim is always legal
    return tile_n


def _vmem_limit_bytes(tile_rows, f_total, x_itemsize):
    x_stream = 2 * tile_rows * f_total * x_itemsize   # double-buffered input tile(s)
    w_bytes = 2 * f_total * 4                         # weight (tiny, single copy)
    out_stream = 2 * tile_rows * 4
    scratch = 4 * tile_rows * _LANES * 4              # chunk accumulator + temps
    need = x_stream + w_bytes + out_stream + scratch + (8 << 20)   # Mosaic headroom
    return int(min(max(need, 32 << 20), 48 << 20))    # 48 MiB < v7x 64 MiB physical


def _cost_estimate(n, f_total, x_itemsize):
    return pl.CostEstimate(
        flops=2 * n * f_total,
        transcendentals=0,
        bytes_accessed=n * f_total * x_itemsize + f_total * 4 + n * 4,
    )


def _compiler_params(tile_rows, f_total, x_itemsize):
    return pltpu.CompilerParams(
        dimension_semantics=("parallel",),            # v7x megacore shards row tiles
        vmem_limit_bytes=_vmem_limit_bytes(tile_rows, f_total, x_itemsize),
    )


def affinity_appearance_forward(x, w_row, b, *, tile_n=None):
    """y = relu(x @ w_row.T + b).  x: (N, F) f32/bf16, w_row: (1, F), b: (1, 1)."""
    n, f = x.shape
    assert w_row.shape == (1, f)
    b = jnp.asarray(b, jnp.float32).reshape(1, 1)
    itemsize = jnp.dtype(x.dtype).itemsize
    tile = _resolve_tile_rows(n, tile_n, f, itemsize)
    return pl.pallas_call(
        _affinity_mlp_kernel,
        out_shape=jax.ShapeDtypeStruct((n, 1), jnp.float32),
        grid=(pl.cdiv(n, tile),),
        in_specs=[
            pl.BlockSpec((tile, f), lambda i: (i, 0)),             # x row tile
            pl.BlockSpec((1, f), lambda i: (0, 0)),                # weight (shared)
            pl.BlockSpec(memory_space=pltpu.MemorySpace.SMEM),     # bias scalar
        ],
        out_specs=pl.BlockSpec((tile, 1), lambda i: (i, 0)),
        compiler_params=_compiler_params(tile, f, itemsize),
        cost_estimate=_cost_estimate(n, f, itemsize),
    )(x, w_row, b)


def affinity_appearance_forward_pair(xa, xb, w_row, b, *, tile_n=None):
    """Fused-concat variant: relu(concat([xa, xb], -1) @ w_row.T + b) without
    ever materializing the concatenated (N, 2C) tensor in HBM."""
    n, ca = xa.shape
    nb, cb = xb.shape
    assert n == nb and xa.dtype == xb.dtype
    f = ca + cb
    assert w_row.shape == (1, f)
    b = jnp.asarray(b, jnp.float32).reshape(1, 1)
    wa, wb = w_row[:, :ca], w_row[:, ca:]
    itemsize = jnp.dtype(xa.dtype).itemsize
    tile = _resolve_tile_rows(n, tile_n, f, itemsize)
    return pl.pallas_call(
        _affinity_mlp_pair_kernel,
        out_shape=jax.ShapeDtypeStruct((n, 1), jnp.float32),
        grid=(pl.cdiv(n, tile),),
        in_specs=[
            pl.BlockSpec((tile, ca), lambda i: (i, 0)),            # first half
            pl.BlockSpec((tile, cb), lambda i: (i, 0)),            # second half
            pl.BlockSpec((1, ca), lambda i: (0, 0)),               # w first half
            pl.BlockSpec((1, cb), lambda i: (0, 0)),               # w second half
            pl.BlockSpec(memory_space=pltpu.MemorySpace.SMEM),     # bias scalar
        ],
        out_specs=pl.BlockSpec((tile, 1), lambda i: (i, 0)),
        compiler_params=_compiler_params(tile, f, itemsize),
        cost_estimate=_cost_estimate(n, f, itemsize),
    )(xa, xb, wa, wb, b)


def init_params(key, in_features):
    """Deterministic init mimicking nn.Linear default (uniform +/- 1/sqrt(fan_in))."""
    kw, kb = jax.random.split(key)
    bound = 1.0 / jnp.sqrt(jnp.float32(in_features))
    # PyTorch stores weight as (out, in) = (1, F); we keep it lane-dense as-is.
    w_row = jax.random.uniform(kw, (1, in_features), jnp.float32, -bound, bound)
    b = jax.random.uniform(kb, (1, 1), jnp.float32, -bound, bound)
    return w_row, b


if __name__ == "__main__":
    # cnn_encoder == 'resnet18' -> nn.Linear(512 * 2, 1) -> in_features = 1024
    C = 512
    IN_FEATURES = 2 * C

    key = jax.random.PRNGKey(0)
    k_xs, k_xl, k_a, k_b, k_p = jax.random.split(key, 5)
    w_row, bias = init_params(k_p, IN_FEATURES)

    def reference(x):
        # pure f32 elementwise reference (same math as the kernel, no MXU)
        y = jnp.sum(x.astype(jnp.float32) * w_row, axis=-1, keepdims=True) + bias
        return jnp.maximum(y, 0.0)

    # 1) small pre-concatenated batch -> single full-array block (tile == N)
    x_small = jax.random.normal(k_xs, (16, IN_FEATURES), jnp.float32)
    out_small = jax.block_until_ready(
        affinity_appearance_forward(x_small, w_row, bias))
    assert out_small.shape == (16, 1)
    assert jnp.allclose(out_small, reference(x_small), atol=1e-4, rtol=1e-4)

    # 2) larger ragged batch, forced small tile -> multi-tile streaming path
    #    with a boundary-masked last block (600 = 2*256 + 88), no jnp.pad copy.
    x_large = jax.random.normal(k_xl, (600, IN_FEATURES), jnp.float32)
    out_large = jax.block_until_ready(
        affinity_appearance_forward(x_large, w_row, bias, tile_n=256))
    assert out_large.shape == (600, 1)
    assert jnp.allclose(out_large, reference(x_large), atol=1e-4, rtol=1e-4)

    # 3) bf16 activations (halves HBM traffic; kernel accumulates in f32)
    x_bf16 = x_large.astype(jnp.bfloat16)
    out_bf16 = jax.block_until_ready(
        affinity_appearance_forward(x_bf16, w_row, bias, tile_n=160))
    assert out_bf16.shape == (600, 1)
    assert jnp.allclose(out_bf16, reference(x_bf16), atol=2e-3, rtol=2e-3)

    # 4) fused-concat path: two (N, C) appearance halves, no XLA concat in HBM
    feat_a = jax.random.normal(k_a, (600, C), jnp.float32)
    feat_b = jax.random.normal(k_b, (600, C), jnp.float32)
    out_pair = jax.block_until_ready(
        affinity_appearance_forward_pair(feat_a, feat_b, w_row, bias, tile_n=256))
    ref_pair = reference(jnp.concatenate([feat_a, feat_b], axis=-1))
    assert out_pair.shape == (600, 1)
    assert jnp.allclose(out_pair, ref_pair, atol=1e-4, rtol=1e-4)

    print("KERNEL_OK")
</pallas_src>

<mosaic_0001>
module attributes {stable_mosaic.version = 11 : i64} {
  func.func @_affinity_mlp_kernel(%arg0: i32, %arg1: memref<16x1024xf32, #tpu.memory_space<vmem>>, %arg2: memref<1x1024xf32, #tpu.memory_space<vmem>>, %arg3: memref<1x1xf32, #tpu.memory_space<smem>>, %arg4: memref<16x1xf32, #tpu.memory_space<vmem>>) attributes {dimension_semantics = [#tpu.dimension_semantics<parallel>], iteration_bounds = array<i64: 1>, scalar_prefetch = 0 : i64, scratch_operands = 0 : i64, tpu.core_type = #tpu.core_type<tc>, window_params = [{transform_indices = @transform_0, window_bounds = array<i64: 16, 1024>}, {pipeline_mode = #tpu.pipeline_mode<synchronous>, transform_indices = @transform_1, window_bounds = array<i64: 1, 1024>}, {transform_indices = @transform_2, window_bounds = array<i64: 1, 1>}, {transform_indices = @transform_3, window_bounds = array<i64: 16, 1>}]} {
    %c0 = arith.constant 0 : index
    %c0_0 = arith.constant 0 : index
    %0 = vector.load %arg1[%c0, %c0_0] : memref<16x1024xf32, #tpu.memory_space<vmem>>, vector<16x128xf32>
    %c0_1 = arith.constant 0 : index
    %c0_2 = arith.constant 0 : index
    %1 = vector.load %arg2[%c0_1, %c0_2] : memref<1x1024xf32, #tpu.memory_space<vmem>>, vector<1x128xf32>
    %2 = vector.broadcast %1 : vector<1x128xf32> to vector<16x128xf32>
    %3 = arith.mulf %0, %2 : vector<16x128xf32>
    %c0_3 = arith.constant 0 : index
    %c128 = arith.constant 128 : index
    %4 = vector.load %arg1[%c0_3, %c128] : memref<16x1024xf32, #tpu.memory_space<vmem>>, vector<16x128xf32>
    %c0_4 = arith.constant 0 : index
    %c128_5 = arith.constant 128 : index
    %5 = vector.load %arg2[%c0_4, %c128_5] : memref<1x1024xf32, #tpu.memory_space<vmem>>, vector<1x128xf32>
    %6 = vector.broadcast %5 : vector<1x128xf32> to vector<16x128xf32>
    %7 = arith.mulf %4, %6 : vector<16x128xf32>
    %8 = arith.addf %3, %7 : vector<16x128xf32>
    %c0_6 = arith.constant 0 : index
    %c256 = arith.constant 256 : index
    %9 = vector.load %arg1[%c0_6, %c256] : memref<16x1024xf32, #tpu.memory_space<vmem>>, vector<16x128xf32>
    %c0_7 = arith.constant 0 : index
    %c256_8 = arith.constant 256 : index
    %10 = vector.load %arg2[%c0_7, %c256_8] : memref<1x1024xf32, #tpu.memory_space<vmem>>, vector<1x128xf32>
    %11 = vector.broadcast %10 : vector<1x128xf32> to vector<16x128xf32>
    %12 = arith.mulf %9, %11 : vector<16x128xf32>
    %13 = arith.addf %8, %12 : vector<16x128xf32>
    %c0_9 = arith.constant 0 : index
    %c384 = arith.constant 384 : index
    %14 = vector.load %arg1[%c0_9, %c384] : memref<16x1024xf32, #tpu.memory_space<vmem>>, vector<16x128xf32>
    %c0_10 = arith.constant 0 : index
    %c384_11 = arith.constant 384 : index
    %15 = vector.load %arg2[%c0_10, %c384_11] : memref<1x1024xf32, #tpu.memory_space<vmem>>, vector<1x128xf32>
    %16 = vector.broadcast %15 : vector<1x128xf32> to vector<16x128xf32>
    %17 = arith.mulf %14, %16 : vector<16x128xf32>
    %18 = arith.addf %13, %17 : vector<16x128xf32>
    %c0_12 = arith.constant 0 : index
    %c512 = arith.constant 512 : index
    %19 = vector.load %arg1[%c0_12, %c512] : memref<16x1024xf32, #tpu.memory_space<vmem>>, vector<16x128xf32>
    %c0_13 = arith.constant 0 : index
    %c512_14 = arith.constant 512 : index
    %20 = vector.load %arg2[%c0_13, %c512_14] : memref<1x1024xf32, #tpu.memory_space<vmem>>, vector<1x128xf32>
    %21 = vector.broadcast %20 : vector<1x128xf32> to vector<16x128xf32>
    %22 = arith.mulf %19, %21 : vector<16x128xf32>
    %23 = arith.addf %18, %22 : vector<16x128xf32>
    %c0_15 = arith.constant 0 : index
    %c640 = arith.constant 640 : index
    %24 = vector.load %arg1[%c0_15, %c640] : memref<16x1024xf32, #tpu.memory_space<vmem>>, vector<16x128xf32>
    %c0_16 = arith.constant 0 : index
    %c640_17 = arith.constant 640 : index
    %25 = vector.load %arg2[%c0_16, %c640_17] : memref<1x1024xf32, #tpu.memory_space<vmem>>, vector<1x128xf32>
    %26 = vector.broadcast %25 : vector<1x128xf32> to vector<16x128xf32>
    %27 = arith.mulf %24, %26 : vector<16x128xf32>
    %28 = arith.addf %23, %27 : vector<16x128xf32>
    %c0_18 = arith.constant 0 : index
    %c768 = arith.constant 768 : index
    %29 = vector.load %arg1[%c0_18, %c768] : memref<16x1024xf32, #tpu.memory_space<vmem>>, vector<16x128xf32>
    %c0_19 = arith.constant 0 : index
    %c768_20 = arith.constant 768 : index
    %30 = vector.load %arg2[%c0_19, %c768_20] : memref<1x1024xf32, #tpu.memory_space<vmem>>, vector<1x128xf32>
    %31 = vector.broadcast %30 : vector<1x128xf32> to vector<16x128xf32>
    %32 = arith.mulf %29, %31 : vector<16x128xf32>
    %33 = arith.addf %28, %32 : vector<16x128xf32>
    %c0_21 = arith.constant 0 : index
    %c896 = arith.constant 896 : index
    %34 = vector.load %arg1[%c0_21, %c896] : memref<16x1024xf32, #tpu.memory_space<vmem>>, vector<16x128xf32>
    %c0_22 = arith.constant 0 : index
    %c896_23 = arith.constant 896 : index
    %35 = vector.load %arg2[%c0_22, %c896_23] : memref<1x1024xf32, #tpu.memory_space<vmem>>, vector<1x128xf32>
    %36 = vector.broadcast %35 : vector<1x128xf32> to vector<16x128xf32>
    %37 = arith.mulf %34, %36 : vector<16x128xf32>
    %38 = arith.addf %33, %37 : vector<16x128xf32>
    %cst = arith.constant dense<0.000000e+00> : vector<16xf32>
    %39 = vector.multi_reduction <add>, %38, %cst [1] : vector<16x128xf32> to vector<16xf32>
    %40 = vector.shape_cast %39 : vector<16xf32> to vector<16x1xf32>
    %c0_24 = arith.constant 0 : index
    %c0_25 = arith.constant 0 : index
    %41 = memref.load %arg3[%c0_24, %c0_25] : memref<1x1xf32, #tpu.memory_space<smem>>
    %42 = vector.broadcast %41 : f32 to vector<16x1xf32>
    %43 = arith.addf %40, %42 : vector<16x1xf32>
    %cst_26 = arith.constant 0.000000e+00 : f32
    %44 = vector.broadcast %cst_26 : f32 to vector<16x1xf32>
    %45 = arith.maximumf %43, %44 : vector<16x1xf32>
    %c0_27 = arith.constant 0 : index
    %c0_28 = arith.constant 0 : index
    %46 = vector.load %arg4[%c0_27, %c0_28] : memref<16x1xf32, #tpu.memory_space<vmem>>, vector<16x1xf32>
    tpu.vector_store %arg4[%c0_27, %c0_28], %45 {strides = array<i32>} : memref<16x1xf32, #tpu.memory_space<vmem>>, vector<16x1xf32>,
    return
  }
  func.func @transform_0(%arg0: i32) -> (i32, i32) {
    %c0_i32 = arith.constant 0 : i32
    %c0_i32_0 = arith.constant 0 : i32
    return %arg0, %c0_i32 : i32, i32
  }
  func.func @transform_1(%arg0: i32) -> (i32, i32) {
    %c0_i32 = arith.constant 0 : i32
    %c0_i32_0 = arith.constant 0 : i32
    %c0_i32_1 = arith.constant 0 : i32
    return %c0_i32, %c0_i32_0 : i32, i32
  }
  func.func @transform_2(%arg0: i32) -> (i32, i32) {
    %c0_i32 = arith.constant 0 : i32
    %c0_i32_0 = arith.constant 0 : i32
    %c0_i32_1 = arith.constant 0 : i32
    return %c0_i32, %c0_i32_0 : i32, i32
  }
  func.func @transform_3(%arg0: i32) -> (i32, i32) {
    %c0_i32 = arith.constant 0 : i32
    %c0_i32_0 = arith.constant 0 : i32
    return %arg0, %c0_i32 : i32, i32
  }
}

</mosaic_0001>

<bundles_post_ra>
// kernel: tpu_custom_call.1
= control target key start
LH: loop header
LB: loop body
LE: loop exit
PB: predicated region body
PF: predicated region fallthrough
CT: control target
= control target key end

     0   :  { %9 = vsyncpa [#allocation4], 0  ;;  %s279_s0 = inlined_call_operand.hbm [shape: f32[16,1024], index: 0, kind: input, shape index: {}]   ;;  %s280_s1 = inlined_call_operand.hbm [shape: f32[1,1024], index: 1, kind: input, shape index: {}]   ;;  %s281_s2 = inlined_call_operand.<no memory space> [shape: f32[1,1], index: 2, kind: input, shape index: {}]   ;;  %s282_s3 = inlined_call_operand.vmem [shape: f32[16,1], index: 3, kind: output, shape index: {}]  }
   0x1   :  { %10 = vsyncpa [#allocation6], 0  ;;  %s222_s12 = smov [#allocation3]   ;;  %s174_s16 = scalar_lea.hbm %s279_s0, 2048 }
   0x2   :  { %s16_s13 = sshll.u32 %s222_s12, 4  ;;  %p175_p0 = scmp.ne.s32.totalorder %s279_s0, %s174_s16  ;;  %s17_s13 = int_to_ptr.vmem [resolvable:$true] %s16_s13 }
   0x3   :  { %p178_p1 = scmp.lt.u32.totalorder %s174_s16, %s279_s0 }
   0x5   :  { %p180_p2 = pnand %p178_p1, %p175_p0 }
   0x7   :  { %183 = shalt.err (!%p180_p2)
}
   0x8   :  { %s184_s21 = scalar_lea.vmem %s17_s13, 2048  ;;  %p189_p4 = scmp.lt.s32.totalorder %s17_s13, %s17_s13 }
   0x9   :  { %p185_p3 = scmp.ne.s32.totalorder %s17_s13, %s184_s21  ;;  %p190_p5 = scmp.lt.s32.totalorder %s184_s21, %s184_s21 }
   0xb   :  { %p191_p6 = por %p190_p5, %p189_p4 }
   0xd   :  { %p192_p7 = pnand %p191_p6, %p185_p3 }
   0xf   :  { %195 = shalt.err (!%p192_p7)
}
  0x10   :  { %s223_s22 = smov 1024   ;;  %s224_s23 = smov 64  }
  0x11   :  { %22 = dma.hbm_to_vmem [thread:$0]  %s279_s0, 2048, %s17_s13, [#allocation4], %s223_s22, %s223_s22, %s224_s23  }
  0x12   :  { %s225_s26 = smov [#allocation5]   ;;  %s196_s30 = scalar_lea.hbm %s280_s1, 128 }
  0x13   :  { %s29_s27 = sshll.u32 %s225_s26, 4  ;;  %p197_p8 = scmp.ne.s32.totalorder %s280_s1, %s196_s30  ;;  %s30_s27 = int_to_ptr.vmem [resolvable:$true] %s29_s27 }
  0x14   :  { %p200_p9 = scmp.lt.u32.totalorder %s196_s30, %s280_s1 }
  0x16   :  { %p202_p10 = pnand %p200_p9, %p197_p8 }
  0x18   :  { %205 = shalt.err (!%p202_p10)
}
  0x19   :  { %s206_s8 = scalar_lea.vmem %s30_s27, 128  ;;  %p211_p12 = scmp.lt.s32.totalorder %s30_s27, %s30_s27 }
  0x1a   :  { %p207_p11 = scmp.ne.s32.totalorder %s30_s27, %s206_s8  ;;  %p212_p13 = scmp.lt.s32.totalorder %s206_s8, %s206_s8 }
  0x1c   :  { %p213_p0 = por %p212_p13, %p211_p12 }
  0x1e   :  { %p214_p1 = pnand %p213_p0, %p207_p11 }
  0x20   :  { %217 = shalt.err (!%p214_p1)
}
  0x21   :  { %32 = dma.hbm_to_vmem [thread:$0]  %s280_s1, 128, %s30_s27, [#allocation6]  }
  0x22   :  { %218 = dma.done.wait [#allocation4], 2048  }
  0x23   :  { %219 = vsyncadd [#allocation4], 4294965248 }
  0x24   :  { %220 = dma.done.wait [#allocation6], 128  }
  0x25   :  { %221 = vsyncadd [#allocation6], 4294967168  ;;  %v41_v0 = vld [vmem:[#allocation3] sm:$0xff]  ;;  %v52_v2 = vld [vmem:[#allocation3 + $0x8] sm:$0xff]  ;;  %v148_v54 = vstv %s281_s2  ;;  %vm153_vm0 = vcmask 7168  }
  0x26   :  { %v162_v1 = vld [vmem:[#allocation5] ss:$0 sm:$0xff]  ;;  %v163_v4 = vld [vmem:[#allocation5 + $0x1] ss:$0 sm:$0xff]  ;;  %v65_v5 = vld [vmem:[#allocation3 + $0x10] sm:$0xff] }
  0x27   :  { %v50_v3 = vmul.f32 %v162_v1, %v41_v0  ;;  %v164_v6 = vld [vmem:[#allocation5 + $0x2] ss:$0 sm:$0xff]  ;;  %v61_v7 = vmul.f32 %v163_v4, %v52_v2  ;;  %v78_v9 = vld [vmem:[#allocation3 + $0x18] sm:$0xff]  ;;  %v165_v10 = vld [vmem:[#allocation5 + $0x3] ss:$0 sm:$0xff] }
  0x28   :  { %v74_v8 = vmul.f32 %v164_v6, %v65_v5  ;;  %v91_v11 = vld [vmem:[#allocation3 + $0x20] sm:$0xff]  ;;  %v87_v14 = vmul.f32 %v165_v10, %v78_v9  ;;  %v104_v15 = vld [vmem:[#allocation3 + $0x28] sm:$0xff]  ;;  %v66_v23 = vld [vmem:[#allocation3 + $0x50] sm:$0xff] }
  0x29   :  { %v166_v12 = vld [vmem:[#allocation5 + $0x4] ss:$0 sm:$0xff]  ;;  %v63_v13 = vadd.f32 %v61_v7, %v50_v3  ;;  %v167_v16 = vld [vmem:[#allocation5 + $0x5] ss:$0 sm:$0xff]  ;;  %v53_v18 = vld [vmem:[#allocation3 + $0x48] sm:$0xff]  ;;  %v75_v27 = vmul.f32 %v164_v6, %v66_v23 }
  0x2a   :  { %v42_v17 = vld [vmem:[#allocation3 + $0x40] sm:$0xff]  ;;  %v100_v20 = vmul.f32 %v166_v12, %v91_v11  ;;  %v62_v22 = vmul.f32 %v163_v4, %v53_v18  ;;  %v79_v24 = vld [vmem:[#allocation3 + $0x58] sm:$0xff]  ;;  %v117_v25 = vld [vmem:[#allocation3 + $0x30] sm:$0xff]  ;;  %v113_v30 = vmul.f32 %v167_v16, %v104_v15 }
  0x2b   :  { %v76_v19 = vadd.f32 %v74_v8, %v63_v13  ;;  %v51_v21 = vmul.f32 %v162_v1, %v42_v17  ;;  %v168_v26 = vld [vmem:[#allocation5 + $0x6] ss:$0 sm:$0xff]  ;;  %v88_v32 = vmul.f32 %v165_v10, %v79_v24  ;;  %v130_v33 = vld [vmem:[#allocation3 + $0x38] sm:$0xff]  ;;  %v169_v34 = vld [vmem:[#allocation5 + $0x7] ss:$0 sm:$0xff] }
  0x2c   :  { %v92_v28 = vld [vmem:[#allocation3 + $0x60] sm:$0xff]  ;;  %v105_v35 = vld [vmem:[#allocation3 + $0x68] sm:$0xff]  ;;  %v126_v37 = vmul.f32 %v168_v26, %v117_v25  ;;  %v118_v40 = vld [vmem:[#allocation3 + $0x70] sm:$0xff]  ;;  %v139_v42 = vmul.f32 %v169_v34, %v130_v33 }
  0x2d   :  { %v89_v29 = vadd.f32 %v87_v14, %v76_v19  ;;  %v64_v31 = vadd.f32 %v62_v22, %v51_v21  ;;  %v101_v39 = vmul.f32 %v166_v12, %v92_v28  ;;  %v114_v44 = vmul.f32 %v167_v16, %v105_v35  ;;  %v131_v45 = vld [vmem:[#allocation3 + $0x78] sm:$0xff] }
  0x2e   :  { %v127_v48 = vmul.f32 %v168_v26, %v118_v40  ;;  %v140_v51 = vmul.f32 %v169_v34, %v131_v45 }
  0x2f   :  { %v102_v36 = vadd.f32 %v100_v20, %v89_v29  ;;  %v77_v38 = vadd.f32 %v75_v27, %v64_v31 }
  0x31   :  { %v115_v41 = vadd.f32 %v113_v30, %v102_v36  ;;  %v90_v43 = vadd.f32 %v88_v32, %v77_v38 }
  0x33   :  { %v128_v46 = vadd.f32 %v126_v37, %v115_v41  ;;  %v103_v47 = vadd.f32 %v101_v39, %v90_v43 }
  0x35   :  { %v141_v49 = vadd.f32 %v139_v42, %v128_v46  ;;  %v116_v50 = vadd.f32 %v114_v44, %v103_v47 }
  0x37   :  { %143 = vadd.xlane.f32.xlu0 %v141_v49  ;;  %v129_v52 = vadd.f32 %v127_v48, %v116_v50 }
  0x39   :  { %v142_v53 = vadd.f32 %v140_v51, %v129_v52 }
  0x3b   :  { %145 = vadd.xlane.f32.xlu0 %v142_v53 }
  0xc4   :  { %v144_v55 = vpop.xlane.xlu0 %143 }
  0xc5   :  { %v149_v56 = vadd.f32 %v148_v54, %v144_v55 }
  0xc7   :  { %v151_v57 = vmax.f32 %v149_v56, 0.0 }
  0xc8   :  { %v146_v58 = vpop.xlane.xlu0 %145 }
  0xc9   :  { %154 = vst.msk [vmem:[%s282_s3] sm:$0xff] %vm153_vm0, %v151_v57  ;;  %v150_v59 = vadd.f32 %v148_v54, %v146_v58 }
  0xcb   :  { %v152_v60 = vmax.f32 %v150_v59, 0.0 }
  0xcd   :  { %155 = vst.msk [vmem:[%s282_s3 + $0x8] sm:$0xff] %vm153_vm0, %v152_v60 }
  0xce   :  { %160 = vsyncpa [#allocation4], 1 }
  0xcf   :  { %161 = vsyncpa [#allocation6], 1 }

</bundles_post_ra>
